<compile_context>
chip_gen: v5e
topology: v5e:2x2
jax: 0.10.0
libtpu: 0.0.40
codegen_flags: <defaults>
</compile_context>

<pallas_src>
import functools

import jax
import jax.numpy as jnp
from jax.experimental import pallas as pl
from jax.experimental.pallas import tpu as pltpu


def _pick_tile(n, cap, align=32, min_steps=1):
    """Largest `align`-multiple divisor of n that is <= cap (and, when possible,
    gives at least `min_steps` grid steps), else n itself (full extent)."""
    cap = min(cap, n)
    if min_steps > 1:
        cap = min(cap, max(n // min_steps, align))
    best = None
    t = align
    while t <= cap:
        if n % t == 0:
            best = t
        t += align
    return best if best is not None else n


def _vmem_capacity_bytes():
    # Generation-aware ceiling (v5e/v6e: 128 MiB, v7x: 64 MiB per TensorCore).
    try:
        return int(pltpu.get_tpu_info().vmem_capacity_bytes)
    except Exception:
        return 64 << 20     # conservative default (v7x)


def _mosaic_params(block_bytes, extra_bytes=0):
    # Tiles are chosen to fit the default scoped VMEM; only raise the limit when
    # the double-buffered working set actually needs it, capped well inside the
    # physical VMEM of the current generation.
    need = 2 * block_bytes + extra_bytes + (2 << 20)
    if need <= (16 << 20):
        limit = None
    else:
        limit = int(min(need, (_vmem_capacity_bytes() * 2) // 5))
    return pltpu.CompilerParams(dimension_semantics=("parallel",),
                                vmem_limit_bytes=limit)


def _gat_project_kernel(h_ref, w_ref, z_ref):
    # Fused all-head projection: one lane-dense bf16 MXU matmul, single output.
    z_ref[...] = jnp.dot(h_ref[...].astype(jnp.bfloat16), w_ref[...],
                         preferred_element_type=jnp.float32).astype(jnp.bfloat16)


def _gat_attn_kernel(zaug_ref, elt_ref, adj_ref, armat_ref, b_ref, out_ref, *,
                     n_heads, out_feats, tile_d, apply_act):
    # zaug_ref : (N_src, H*(F+1)) bf16  projected features, per-head [z_h | 1]
    # elt_ref  : (H, N_src) f32         src-side attention scores, lane-oriented
    # adj_ref  : (TILE_D, N_src) i8     dense adjacency mask tile
    # armat_ref: (H*(F+1), H) f32       block-diagonal attn_r (zero row for ones col)
    # b_ref    : (1, H*F) f32           bias (all heads, head-major)
    # out_ref  : (TILE_D, H*F) f32      lane-dense output (== flatten(1) layout)
    f1 = out_feats + 1

    # Additive mask, hoisted out of the head loop (one compare + select per tile).
    neg = jnp.where(adj_ref[...] > 0, jnp.float32(0.0), jnp.float32(-1e30))

    # dst-side attention scores for this tile: dst nodes are the leading src rows
    # of the DGL block, so they are a dynamic sublane slice of the resident z.
    row0 = pl.multiple_of(pl.program_id(0) * tile_d, tile_d)
    z_dst = zaug_ref[pl.ds(row0, tile_d), :].astype(jnp.float32)   # (TILE_D, H*(F+1))
    er = jnp.dot(z_dst, armat_ref[...],
                 preferred_element_type=jnp.float32)               # (TILE_D, H)

    elt = elt_ref[...]                                             # (H, N_src)

    head_outs = []
    for hh in range(n_heads):                                      # static unroll
        s = er[:, hh:hh + 1] + elt[hh:hh + 1, :]                   # (TILE_D, N_src)
        s = jnp.maximum(s, 0.2 * s)                                # LeakyReLU(0.2)
        e = s + neg                                                # mask via add
        m = jnp.max(e, axis=-1, keepdims=True)
        # Masked lanes underflow to exactly 0 after the row-max shift; softmax
        # normalization is deferred, so p only feeds the bf16 MXU matmul.
        # (Rows with zero in-degree would average z; the DGL block guarantees
        #  self-loops / nonzero in-degree, matching GATConv's contract.)
        p = jnp.exp(e - m).astype(jnp.bfloat16)                    # (TILE_D, N_src)
        zh1 = zaug_ref[:, hh * f1:(hh + 1) * f1]                   # (N_src, F+1)
        res = jnp.dot(p, zh1, preferred_element_type=jnp.float32)  # (TILE_D, F+1)
        agg = res[:, :out_feats]                                   # unnormalized sum
        den = jnp.maximum(res[:, out_feats:f1], jnp.float32(1e-20))
        # Deferred softmax normalization on the (TILE_D, F) result (EUP recip).
        head_outs.append(agg * pl.reciprocal(den, approx=True))
    out = head_outs[0] if n_heads == 1 else jnp.concatenate(head_outs, axis=-1)
    out = out + b_ref[...]                                         # GATConv bias
    if apply_act:
        out = jnp.where(out > 0, out, jnp.exp(out) - 1.0)          # ELU activation
    out_ref[...] = out


def gat_conv_pallas(h, adj, w, attn_l, attn_r, bias, *, n_heads, out_feats,
                    apply_act, tile_src_cap=512, tile_dst_cap=512):
    """One DGL GATConv layer. Returns (N_dst, H*F), head-major (== h.flatten(1))."""
    n_src, in_feats = h.shape
    n_dst, n_src_a = adj.shape
    assert n_src_a == n_src and n_dst <= n_src  # DGL block: dst nodes = src prefix
    hf = n_heads * out_feats
    f1 = out_feats + 1
    hf1 = n_heads * f1

    h = h.astype(jnp.float32)
    w_b = w.astype(jnp.bfloat16)                                   # (Din, H*F)
    adj_i8 = adj.astype(jnp.int8)                                  # only compared > 0
    b2 = bias.reshape(1, hf).astype(jnp.float32)

    # >=2 grid steps (>=4 on the dst axis) so both v7x TensorCores get work and
    # the pipeline has something to overlap; tiles stay 32-aligned divisors.
    tile_s = _pick_tile(n_src, tile_src_cap, min_steps=2)
    tile_d = _pick_tile(n_dst, tile_dst_cap, min_steps=4)

    # ---- kernel 1: fused all-head projection (single lane-dense output) -------
    k1_bytes = tile_s * in_feats * 4 + in_feats * hf * 2 + tile_s * hf * 2
    z = pl.pallas_call(
        _gat_project_kernel,
        out_shape=jax.ShapeDtypeStruct((n_src, hf), jnp.bfloat16),
        grid=(n_src // tile_s,),
        in_specs=[pl.BlockSpec((tile_s, in_feats), lambda i: (i, 0)),
                  pl.BlockSpec((in_feats, hf), lambda i: (0, 0))],
        out_specs=pl.BlockSpec((tile_s, hf), lambda i: (i, 0)),
        compiler_params=_mosaic_params(k1_bytes),
    )(h, w_b)

    # src-side attention scores, lane-oriented (H, N_src).  One tiny XLA op so
    # kernel 1 keeps a single lane-dense output and no in-kernel transpose is
    # needed anywhere.
    # TODO(synk): fold into kernel 1 as a lane-dense (H, tile_s) output once a
    # small in-kernel (tile_s, H) -> (H, tile_s) transpose is cheap in Mosaic.
    elt = jnp.einsum('shf,hf->hs',
                     z.astype(jnp.float32).reshape(n_src, n_heads, out_feats),
                     attn_l.astype(jnp.float32))

    # z augmented with a per-head ones column: p @ [z_h | 1] fuses the softmax
    # denominator into the aggregation matmul (no XLU row-sum in kernel 2).
    z_aug = jnp.concatenate(
        [z.reshape(n_src, n_heads, out_feats),
         jnp.ones((n_src, n_heads, 1), jnp.bfloat16)],
        axis=-1).reshape(n_src, hf1)

    # Block-diagonal attn_r (zero row for each ones column) so kernel 2 computes
    # er from the resident z_aug dst rows with one tiny MXU matmul.
    eye = jnp.eye(n_heads, dtype=jnp.float32)
    ar_pad = jnp.concatenate(
        [attn_r.astype(jnp.float32), jnp.zeros((n_heads, 1), jnp.float32)], axis=-1)
    ar_mat = (ar_pad[:, :, None] * eye[:, None, :]).reshape(hf1, n_heads)

    # ---- kernel 2: masked edge-softmax + aggregation, tiled over dst nodes ----
    k2_bytes = (n_src * hf1 * 2 + n_heads * n_src * 4 + tile_d * n_src
                + hf1 * n_heads * 4 + hf * 4 + tile_d * hf * 4)
    k2_extra = tile_d * n_src * 12 + (1 << 20)   # neg/e f32 + bf16 p temporaries
    kernel = functools.partial(_gat_attn_kernel, n_heads=n_heads,
                               out_feats=out_feats, tile_d=tile_d,
                               apply_act=apply_act)
    out = pl.pallas_call(
        kernel,
        out_shape=jax.ShapeDtypeStruct((n_dst, hf), jnp.float32),
        grid=(n_dst // tile_d,),
        in_specs=[
            pl.BlockSpec((n_src, hf1), lambda i: (0, 0)),      # z_aug, all src nodes
            pl.BlockSpec((n_heads, n_src), lambda i: (0, 0)),  # elt (lane-oriented)
            pl.BlockSpec((tile_d, n_src), lambda i: (i, 0)),   # int8 adjacency tile
            pl.BlockSpec((hf1, n_heads), lambda i: (0, 0)),    # block-diag attn_r
            pl.BlockSpec((1, hf), lambda i: (0, 0)),           # bias (all heads)
        ],
        out_specs=pl.BlockSpec((tile_d, hf), lambda i: (i, 0)),  # lane-dense output
        compiler_params=_mosaic_params(k2_bytes, k2_extra),
    )(z_aug, elt, adj_i8, ar_mat, b2)
    return out


class DGLGATPallas:
    """Mirror of DGLGAT.__init__ / forward with deterministic synthetic params."""

    def __init__(self, key, fan_out, in_feats, n_hidden, n_classes, heads):
        self.n_layers = len(fan_out)
        self.heads = heads
        dims = []  # (in_dim, out_dim, n_heads, apply_activation) per layer
        if self.n_layers > 1:
            dims.append((in_feats, n_hidden, heads[0], True))
            for i in range(1, self.n_layers - 1):
                dims.append((n_hidden * heads[i - 1], n_hidden, heads[i], True))
            dims.append((n_hidden * heads[-2], n_classes, heads[-1], False))
        else:
            dims.append((in_feats, n_classes, heads[0], False))
        self.layer_cfg = dims

        self.params = []
        for (din, dout, nh, _act) in dims:
            key, kw, kl, kr, kb = jax.random.split(key, 5)
            scale = 1.0 / jnp.sqrt(jnp.float32(din))
            w = jax.random.normal(kw, (din, nh * dout), jnp.float32) * scale
            attn_l = jax.random.normal(kl, (nh, dout), jnp.float32) * 0.1
            attn_r = jax.random.normal(kr, (nh, dout), jnp.float32) * 0.1
            bias = jax.random.normal(kb, (nh * dout,), jnp.float32) * 0.05
            self.params.append((w, attn_l, attn_r, bias))

    def forward(self, blocks, x):
        # TODO(synk): feat_drop / attn_drop are eval-mode identity (dropout == 0.0).
        h = x
        for l, (adj, (w, al, ar, b), cfg) in enumerate(
                zip(blocks, self.params, self.layer_cfg)):
            _din, dout, nh, apply_act = cfg
            out = gat_conv_pallas(h, adj, w, al, ar, b, n_heads=nh, out_feats=dout,
                                  apply_act=apply_act)       # (N_dst, H*F) head-major
            if l == self.n_layers - 1:
                h = out.reshape(adj.shape[0], nh, dout).mean(axis=1)   # h.mean(1)
            else:
                h = out                                       # already == h.flatten(1)
        return h


def _gat_conv_ref(h, adj, w, attn_l, attn_r, bias, n_heads, out_feats, apply_act):
    """Pure-JAX reference for one GATConv layer (dense-block semantics).  Matmul
    operands are rounded to bf16 exactly like the kernel so the check stays tight."""
    n_src = h.shape[0]
    n_dst = adj.shape[0]
    hb = h.astype(jnp.bfloat16).astype(jnp.float32)
    wb = w.astype(jnp.bfloat16).astype(jnp.float32)
    z = (hb @ wb).astype(jnp.bfloat16).astype(jnp.float32)   # kernel stores z in bf16
    z3 = z.reshape(n_src, n_heads, out_feats)
    el = jnp.einsum('shf,hf->sh', z3, attn_l)
    er = jnp.einsum('dhf,hf->dh', z3[:n_dst], attn_r)
    e = er[:, None, :] + el[None, :, :]                      # (N_dst, N_src, H)
    e = jnp.where(e > 0, e, 0.2 * e)                         # LeakyReLU(0.2)
    mask = (adj > 0)[:, :, None]
    e = jnp.where(mask, e, -1e30)
    p = jnp.where(mask, jnp.exp(e - jnp.max(e, axis=1, keepdims=True)), 0.0)
    pb = p.astype(jnp.bfloat16).astype(jnp.float32)          # kernel feeds bf16 p to MXU
    agg = jnp.einsum('dsh,shf->dhf', pb, z3)                 # unnormalized aggregation
    den = jnp.maximum(jnp.sum(pb, axis=1), 1e-20)            # (N_dst, H)
    out = agg / den[:, :, None] + bias.reshape(1, n_heads, out_feats)
    if apply_act:
        out = jnp.where(out > 0, out, jnp.exp(out) - 1.0)    # ELU
    return out.reshape(n_dst, n_heads * out_feats)           # head-major == flatten(1)


if __name__ == "__main__":
    key = jax.random.PRNGKey(0)

    # Model config (args): fan_out=[10,10] -> 2 layers, input_dim=32,
    # num_hidden=16, num_classes=8, heads=[2,2], dropout=0.0 (eval mode).
    fan_out = [10, 10]
    input_dim, num_hidden, num_classes = 32, 16, 8
    heads = [2, 2]

    # Synthetic DGL blocks: layer0 1024 src -> 512 dst, layer1 512 src -> 128 dst.
    # Dst nodes are the leading src nodes; self-loops guarantee nonzero in-degree.
    n_src0, n_dst0, n_dst1 = 1024, 512, 128
    key, kx, ka0, ka1 = jax.random.split(key, 4)
    x = jax.random.normal(kx, (n_src0, input_dim), jnp.float32)

    adj0 = (jax.random.uniform(ka0, (n_dst0, n_src0)) < 0.05)
    adj0 = jnp.logical_or(adj0, jnp.eye(n_dst0, n_src0, dtype=bool)).astype(jnp.int8)
    adj1 = (jax.random.uniform(ka1, (n_dst1, n_dst0)) < 0.05)
    adj1 = jnp.logical_or(adj1, jnp.eye(n_dst1, n_dst0, dtype=bool)).astype(jnp.int8)
    blocks = [adj0, adj1]

    key, kp = jax.random.split(key)
    model = DGLGATPallas(kp, fan_out, input_dim, num_hidden, num_classes, heads)

    out = jax.block_until_ready(model.forward(blocks, x))
    assert out.shape == (n_dst1, num_classes), out.shape

    # Cross-check against a pure-JAX reference with matched matmul rounding.
    h_ref = x
    for l, (adj, (w, al, ar, b), cfg) in enumerate(
            zip(blocks, model.params, model.layer_cfg)):
        _din, dout, nh, apply_act = cfg
        o = _gat_conv_ref(h_ref, adj, w, al, ar, b, nh, dout, apply_act)
        if l == model.n_layers - 1:
            h_ref = o.reshape(adj.shape[0], nh, dout).mean(axis=1)
        else:
            h_ref = o
    max_err = float(jnp.max(jnp.abs(out - h_ref)))
    assert jnp.allclose(out, h_ref, atol=3e-2, rtol=3e-2), max_err

    print("KERNEL_OK")
</pallas_src>

<mosaic_0001>
module attributes {stable_mosaic.version = 11 : i64} {
  func.func @_gat_project_kernel(%arg0: i32, %arg1: memref<512x32xf32, #tpu.memory_space<vmem>>, %arg2: memref<32x32xbf16, #tpu.memory_space<vmem>>, %arg3: memref<512x32xbf16, #tpu.memory_space<vmem>>) attributes {dimension_semantics = [#tpu.dimension_semantics<parallel>], iteration_bounds = array<i64: 2>, scalar_prefetch = 0 : i64, scratch_operands = 0 : i64, tpu.core_type = #tpu.core_type<tc>, window_params = [{transform_indices = @transform_0, window_bounds = array<i64: 512, 32>}, {pipeline_mode = #tpu.pipeline_mode<synchronous>, transform_indices = @transform_1, window_bounds = array<i64: 32, 32>}, {transform_indices = @transform_2, window_bounds = array<i64: 512, 32>}]} {
    %c0 = arith.constant 0 : index
    %c0_0 = arith.constant 0 : index
    %0 = vector.load %arg1[%c0, %c0_0] : memref<512x32xf32, #tpu.memory_space<vmem>>, vector<512x32xf32>
    %1 = arith.truncf %0 : vector<512x32xf32> to vector<512x32xbf16>
    %c0_1 = arith.constant 0 : index
    %c0_2 = arith.constant 0 : index
    %2 = vector.load %arg2[%c0_1, %c0_2] : memref<32x32xbf16, #tpu.memory_space<vmem>>, vector<32x32xbf16>
    %cst = arith.constant dense<0.000000e+00> : vector<512x32xf32>
    %3 = tpu.matmul %1, %2, %cst {dimension_numbers = #tpu.dot_dimension_numbers<[1], [0], [0], [1], [0, 0, 1, 1], [], []>} : vector<512x32xbf16>, vector<32x32xbf16>, vector<512x32xf32> -> vector<512x32xf32>
    %4 = arith.truncf %3 : vector<512x32xf32> to vector<512x32xbf16>
    %c0_3 = arith.constant 0 : index
    %c0_4 = arith.constant 0 : index
    %5 = vector.load %arg3[%c0_3, %c0_4] : memref<512x32xbf16, #tpu.memory_space<vmem>>, vector<512x32xbf16>
    tpu.vector_store %arg3[%c0_3, %c0_4], %4 {strides = array<i32>} : memref<512x32xbf16, #tpu.memory_space<vmem>>, vector<512x32xbf16>,
    return
  }
  func.func @transform_0(%arg0: i32) -> (i32, i32) {
    %c0_i32 = arith.constant 0 : i32
    %c0_i32_0 = arith.constant 0 : i32
    return %arg0, %c0_i32 : i32, i32
  }
  func.func @transform_1(%arg0: i32) -> (i32, i32) {
    %c0_i32 = arith.constant 0 : i32
    %c0_i32_0 = arith.constant 0 : i32
    %c0_i32_1 = arith.constant 0 : i32
    return %c0_i32, %c0_i32_0 : i32, i32
  }
  func.func @transform_2(%arg0: i32) -> (i32, i32) {
    %c0_i32 = arith.constant 0 : i32
    %c0_i32_0 = arith.constant 0 : i32
    return %arg0, %c0_i32 : i32, i32
  }
}

</mosaic_0001>

<bundles_post_ra>
// kernel: tpu_custom_call.1
= control target key start
LH: loop header
LB: loop body
LE: loop exit
PB: predicated region body
PF: predicated region fallthrough
CT: control target
= control target key end

     0   :  { %s801_s9 = smov 0   ;;  %s1056_s0 = inlined_call_operand.vmem [shape: f32[1024,32], index: 0, kind: input, shape index: {}]   ;;  %s1057_s1 = inlined_call_operand.vmem [shape: bf16[32,32], index: 1, kind: input, shape index: {}]   ;;  %s1058_s2 = inlined_call_operand.vmem [shape: bf16[1024,32], index: 2, kind: output, shape index: {}]  }
   0x1 LB: > { %s711_s10 = sadd.s32 4294967295, %s784_s9   ;;  %p715_p0 = scmp.ge.s32.totalorder %s784_s9, 1  ;;  %s784_s9 = sphi %s801_s9, %s12_s9  }
   0x2   : > { %p113_p1 = scmp.lt.s32.totalorder %s784_s9, 3 }
   0x4   : > { %p114_p2 = pnand %p715_p0, %p113_p1 }
   0x5   : > { %s716_s13 = sshll.u32 (!%p114_p2), %s711_s10, 6 }
   0x6   : > { %117 = sbr.rel (%p114_p2) target bundleno = 276 (0x114), region = 28  ;;  %p136_p3 = scmp.lt.s32.totalorder (!%p114_p2), %s716_s13, 127 }
   0xb   : > { %v763_v0 = vld [vmem:[%s1057_s1 + $0x8] sm:$0xff]  ;;  %v762_v1 = vld [vmem:[%s1057_s1] sm:$0xff]  ;;  %s1060_s13 = smov (!%p136_p3, %s716_s13), 127  ;;  %vm260_vm0 = vcmask 261120   ;;  %vm590_vm1 = vcmask 257024  }
   0xc   : > { %363 = vmatpush.bf16.msra.mxu0 %v763_v0  ;;  %764 = vmatpush.bf16.msra.mxu1 %v763_v0  ;;  %s717_s16 = sshll.u32 %s1060_s13, 3  ;;  %s719_s20 = sshll.u32 %s1060_s13, 2 }
   0xd   : > { %765 = vmatpush.bf16.msra.mxu2 %v763_v0  ;;  %766 = vmatpush.bf16.msra.mxu3 %v763_v0  ;;  %s821_s19 = scalar_lea.vmem %s1056_s0, %s717_s16  ;;  %s923_s23 = scalar_lea.vmem %s1058_s2, %s719_s20 }
   0xe   : > { %v148_v2 = vld [vmem:[%s821_s19] sm:$0xff]  ;;  %v149_v3 = vld [vmem:[%s821_s19 + $0x8] sm:$0xff]  ;;  %v150_v14 = vld [vmem:[%s821_s19 + $0x10] sm:$0xff] }
   0xf   : > { %v164_v4 = vld [vmem:[%s821_s19 + $0x80] sm:$0xff]  ;;  %v212_v5 = vpack.c.bf16 %v149_v3, %v148_v2  ;;  %v165_v6 = vld [vmem:[%s821_s19 + $0x88] sm:$0xff]  ;;  %v151_v15 = vld [vmem:[%s821_s19 + $0x18] sm:$0xff] }
  0x10   : > { %364 = vmatpush.bf16.msra.mxu0 %v762_v1  ;;  %767 = vmatpush.bf16.msra.mxu1 %v762_v1  ;;  %v180_v7 = vld [vmem:[%s821_s19 + $0x100] sm:$0xff]  ;;  %v181_v8 = vld [vmem:[%s821_s19 + $0x108] sm:$0xff]  ;;  %v220_v9 = vpack.c.bf16 %v165_v6, %v164_v4  ;;  %v166_v16 = vld [vmem:[%s821_s19 + $0x90] sm:$0xff]  ;;  %v213_v22 = vpack.c.bf16 %v151_v15, %v150_v14 }
  0x11   : > { %768 = vmatpush.bf16.msra.mxu2 %v762_v1  ;;  %769 = vmatpush.bf16.msra.mxu3 %v762_v1  ;;  %v228_v10 = vpack.c.bf16 %v181_v8, %v180_v7  ;;  %v196_v11 = vld [vmem:[%s821_s19 + $0x180] sm:$0xff]  ;;  %v197_v12 = vld [vmem:[%s821_s19 + $0x188] sm:$0xff]  ;;  %v167_v17 = vld [vmem:[%s821_s19 + $0x98] sm:$0xff] }
  0x12   : > { %v236_v13 = vpack.c.bf16 %v197_v12, %v196_v11  ;;  %v182_v18 = vld [vmem:[%s821_s19 + $0x110] sm:$0xff]  ;;  %v183_v19 = vld [vmem:[%s821_s19 + $0x118] sm:$0xff]  ;;  %v221_v23 = vpack.c.bf16 %v167_v17, %v166_v16  ;;  %v152_v26 = vld [vmem:[%s821_s19 + $0x20] sm:$0xff] }
  0x13   : > { %728 = vmatmul.msk.bf16.vlgmr.msra.gmra.mxu0 %vm260_vm0, %v212_v5  ;;  %736 = vmatmul.msk.bf16.vlgmr.msra.gmra.mxu1 %vm260_vm0, %v220_v9  ;;  %v198_v20 = vld [vmem:[%s821_s19 + $0x190] sm:$0xff]  ;;  %v199_v21 = vld [vmem:[%s821_s19 + $0x198] sm:$0xff]  ;;  %v229_v24 = vpack.c.bf16 %v183_v19, %v182_v18  ;;  %v153_v27 = vld [vmem:[%s821_s19 + $0x28] sm:$0xff] }
  0x14   : > { %744 = vmatmul.msk.bf16.vlgmr.msra.gmra.mxu2 %vm260_vm0, %v228_v10  ;;  %752 = vmatmul.msk.bf16.vlgmr.msra.gmra.mxu3 %vm260_vm0, %v236_v13  ;;  %v237_v25 = vpack.c.bf16 %v199_v21, %v198_v20  ;;  %v168_v28 = vld [vmem:[%s821_s19 + $0xa0] sm:$0xff]  ;;  %v169_v29 = vld [vmem:[%s821_s19 + $0xa8] sm:$0xff]  ;;  %v214_v34 = vpack.c.bf16 %v153_v27, %v152_v26  ;;  %v154_v38 = vld [vmem:[%s821_s19 + $0x30] sm:$0xff] }
  0x15   : > { %v184_v30 = vld [vmem:[%s821_s19 + $0x120] sm:$0xff]  ;;  %v185_v31 = vld [vmem:[%s821_s19 + $0x128] sm:$0xff]  ;;  %v222_v35 = vpack.c.bf16 %v169_v29, %v168_v28  ;;  %v155_v39 = vld [vmem:[%s821_s19 + $0x38] sm:$0xff] }
  0x16   : > { %v200_v32 = vld [vmem:[%s821_s19 + $0x1a0] sm:$0xff]  ;;  %v201_v33 = vld [vmem:[%s821_s19 + $0x1a8] sm:$0xff]  ;;  %v230_v36 = vpack.c.bf16 %v185_v31, %v184_v30  ;;  %v170_v40 = vld [vmem:[%s821_s19 + $0xb0] sm:$0xff]  ;;  %v215_v46 = vpack.c.bf16 %v155_v39, %v154_v38 }
  0x17   : > { %v238_v37 = vpack.c.bf16 %v201_v33, %v200_v32  ;;  %v171_v41 = vld [vmem:[%s821_s19 + $0xb8] sm:$0xff]  ;;  %v186_v42 = vld [vmem:[%s821_s19 + $0x130] sm:$0xff]  ;;  %v156_v50 = vld [vmem:[%s821_s19 + $0x40] sm:$0xff] }
  0x18   : > { %v187_v43 = vld [vmem:[%s821_s19 + $0x138] sm:$0xff]  ;;  %v202_v44 = vld [vmem:[%s821_s19 + $0x1b0] sm:$0xff]  ;;  %v223_v47 = vpack.c.bf16 %v171_v41, %v170_v40  ;;  %v157_v51 = vld [vmem:[%s821_s19 + $0x48] sm:$0xff] }
  0x19   : > { %v203_v45 = vld [vmem:[%s821_s19 + $0x1b8] sm:$0xff]  ;;  %v231_v48 = vpack.c.bf16 %v187_v43, %v186_v42  ;;  %v172_v52 = vld [vmem:[%s821_s19 + $0xc0] sm:$0xff]  ;;  %v173_v53 = vld [vmem:[%s821_s19 + $0xc8] sm:$0xff]  ;;  %v216_v58 = vpack.c.bf16 %v157_v51, %v156_v50 }
  0x1a   : > { %v239_v49 = vpack.c.bf16 %v203_v45, %v202_v44  ;;  %v188_v54 = vld [vmem:[%s821_s19 + $0x140] sm:$0xff]  ;;  %v189_v55 = vld [vmem:[%s821_s19 + $0x148] sm:$0xff]  ;;  %v224_v59 = vpack.c.bf16 %v173_v53, %v172_v52  ;;  %v158_v62 = vld [vmem:[%s821_s19 + $0x50] sm:$0xff] }
  0x1b   : > { %v204_v56 = vld [vmem:[%s821_s19 + $0x1c0] sm:$0xff]  ;;  %v205_v57 = vld [vmem:[%s821_s19 + $0x1c8] sm:$0xff]  ;;  %v232_v60 = vpack.c.bf16 %v189_v55, %v188_v54  ;;  %v159_v63 = vld [vmem:[%s821_s19 + $0x58] sm:$0xff] }
  0x1c   : > { %v240_v61 = vpack.c.bf16 %v205_v57, %v204_v56  ;;  %v174_v0 = vld [vmem:[%s821_s19 + $0xd0] sm:$0xff]  ;;  %v175_v1 = vld [vmem:[%s821_s19 + $0xd8] sm:$0xff]  ;;  %v217_v6 = vpack.c.bf16 %v159_v63, %v158_v62  ;;  %v160_v10 = vld [vmem:[%s821_s19 + $0x60] sm:$0xff] }
  0x1d   : > { %v190_v2 = vld [vmem:[%s821_s19 + $0x150] sm:$0xff]  ;;  %v191_v3 = vld [vmem:[%s821_s19 + $0x158] sm:$0xff]  ;;  %v225_v7 = vpack.c.bf16 %v175_v1, %v174_v0  ;;  %v161_v11 = vld [vmem:[%s821_s19 + $0x68] sm:$0xff] }
  0x1e   : > { %v206_v4 = vld [vmem:[%s821_s19 + $0x1d0] sm:$0xff]  ;;  %v207_v5 = vld [vmem:[%s821_s19 + $0x1d8] sm:$0xff]  ;;  %v233_v8 = vpack.c.bf16 %v191_v3, %v190_v2  ;;  %v176_v12 = vld [vmem:[%s821_s19 + $0xe0] sm:$0xff]  ;;  %v218_v18 = vpack.c.bf16 %v161_v11, %v160_v10 }
  0x1f   : > { %v241_v9 = vpack.c.bf16 %v207_v5, %v206_v4  ;;  %v177_v13 = vld [vmem:[%s821_s19 + $0xe8] sm:$0xff]  ;;  %v192_v14 = vld [vmem:[%s821_s19 + $0x160] sm:$0xff]  ;;  %v194_v26 = vld [vmem:[%s821_s19 + $0x170] sm:$0xff] }
  0x20   : > { %v193_v15 = vld [vmem:[%s821_s19 + $0x168] sm:$0xff]  ;;  %v208_v16 = vld [vmem:[%s821_s19 + $0x1e0] sm:$0xff]  ;;  %v226_v19 = vpack.c.bf16 %v177_v13, %v176_v12  ;;  %v195_v27 = vld [vmem:[%s821_s19 + $0x178] sm:$0xff] }
  0x21   : > { %v209_v17 = vld [vmem:[%s821_s19 + $0x1e8] sm:$0xff]  ;;  %v234_v20 = vpack.c.bf16 %v193_v15, %v192_v14  ;;  %v210_v28 = vld [vmem:[%s821_s19 + $0x1f0] sm:$0xff]  ;;  %v211_v29 = vld [vmem:[%s821_s19 + $0x1f8] sm:$0xff]  ;;  %v235_v32 = vpack.c.bf16 %v195_v27, %v194_v26 }
  0x22   : > { %v242_v21 = vpack.c.bf16 %v209_v17, %v208_v16  ;;  %v243_v33 = vpack.c.bf16 %v211_v29, %v210_v28 }
  0x23   : > { %729 = vmatmul.msk.bf16.gmra.mxu0 %vm260_vm0, %v213_v22  ;;  %737 = vmatmul.msk.bf16.gmra.mxu1 %vm260_vm0, %v221_v23  ;;  %v162_v22 = vld [vmem:[%s821_s19 + $0x70] sm:$0xff]  ;;  %v163_v23 = vld [vmem:[%s821_s19 + $0x78] sm:$0xff] }
  0x24   : > { %745 = vmatmul.msk.bf16.gmra.mxu2 %vm260_vm0, %v229_v24  ;;  %753 = vmatmul.msk.bf16.gmra.mxu3 %vm260_vm0, %v237_v25  ;;  %v178_v24 = vld [vmem:[%s821_s19 + $0xf0] sm:$0xff]  ;;  %v179_v25 = vld [vmem:[%s821_s19 + $0xf8] sm:$0xff]  ;;  %v219_v30 = vpack.c.bf16 %v163_v23, %v162_v22 }
  0x25   : > { %v227_v31 = vpack.c.bf16 %v179_v25, %v178_v24 }
  0x33   : > { %730 = vmatmul.msk.bf16.gmra.mxu0 %vm260_vm0, %v214_v34  ;;  %738 = vmatmul.msk.bf16.gmra.mxu1 %vm260_vm0, %v222_v35 }
  0x34   : > { %746 = vmatmul.msk.bf16.gmra.mxu2 %vm260_vm0, %v230_v36  ;;  %754 = vmatmul.msk.bf16.gmra.mxu3 %vm260_vm0, %v238_v37 }
  0x43   : > { %731 = vmatmul.msk.bf16.gmra.mxu0 %vm260_vm0, %v215_v46  ;;  %739 = vmatmul.msk.bf16.gmra.mxu1 %vm260_vm0, %v223_v47 }
  0x44   : > { %747 = vmatmul.msk.bf16.gmra.mxu2 %vm260_vm0, %v231_v48  ;;  %755 = vmatmul.msk.bf16.gmra.mxu3 %vm260_vm0, %v239_v49 }
  0x53   : > { %732 = vmatmul.msk.bf16.gmra.mxu0 %vm260_vm0, %v216_v58  ;;  %740 = vmatmul.msk.bf16.gmra.mxu1 %vm260_vm0, %v224_v59 }
  0x54   : > { %748 = vmatmul.msk.bf16.gmra.mxu2 %vm260_vm0, %v232_v60  ;;  %756 = vmatmul.msk.bf16.gmra.mxu3 %vm260_vm0, %v240_v61 }
  0x63   : > { %733 = vmatmul.msk.bf16.gmra.mxu0 %vm260_vm0, %v217_v6  ;;  %741 = vmatmul.msk.bf16.gmra.mxu1 %vm260_vm0, %v225_v7 }
  0x64   : > { %749 = vmatmul.msk.bf16.gmra.mxu2 %vm260_vm0, %v233_v8  ;;  %757 = vmatmul.msk.bf16.gmra.mxu3 %vm260_vm0, %v241_v9 }
  0x73   : > { %734 = vmatmul.msk.bf16.gmra.mxu0 %vm260_vm0, %v218_v18  ;;  %742 = vmatmul.msk.bf16.gmra.mxu1 %vm260_vm0, %v226_v19 }
  0x74   : > { %750 = vmatmul.msk.bf16.gmra.mxu2 %vm260_vm0, %v234_v20  ;;  %758 = vmatmul.msk.bf16.gmra.mxu3 %vm260_vm0, %v242_v21 }
  0x83   : > { %735 = vmatmul.msk.bf16.gmra.mxu0 %vm260_vm0, %v219_v30  ;;  %743 = vmatmul.msk.bf16.gmra.mxu1 %vm260_vm0, %v227_v31 }
  0x84   : > { %751 = vmatmul.msk.bf16.gmra.mxu2 %vm260_vm0, %v235_v32  ;;  %759 = vmatmul.msk.bf16.gmra.mxu3 %vm260_vm0, %v243_v33 }
  0x90   : > { %v366_v34 = vpop.f32.mrf.mxu0  ;;  %v406_v36 = vpop.f32.mrf.mxu1 }
  0x91   : > { %v526_v35 = vpack.c.bf16 %v366_v34, %v366_v34  ;;  %v542_v37 = vpack.c.bf16 %v406_v36, %v406_v36 }
  0x93   : > { %591 = vst.msk [vmem:[%s923_s23] sm:$0xf] %vm590_vm1, %v526_v35 }
  0x94   : > { %607 = vst.msk [vmem:[%s923_s23 + $0x40] sm:$0xf] %vm590_vm1, %v542_v37 }
  0x97   : > { %v446_v38 = vpop.f32.mrf.mxu2  ;;  %v486_v40 = vpop.f32.mrf.mxu3 }
  0x98   : > { %v558_v39 = vpack.c.bf16 %v446_v38, %v446_v38  ;;  %v368_v41 = vpop.f32.mrf.mxu0  ;;  %v574_v42 = vpack.c.bf16 %v486_v40, %v486_v40  ;;  %v408_v44 = vpop.f32.mrf.mxu1 }
  0x99   : > { %v527_v43 = vpack.c.bf16 %v368_v41, %v368_v41  ;;  %v543_v45 = vpack.c.bf16 %v408_v44, %v408_v44 }
  0x9a   : > { %623 = vst.msk [vmem:[%s923_s23 + $0x80] sm:$0xf] %vm590_vm1, %v558_v39 }
  0x9b   : > { %639 = vst.msk [vmem:[%s923_s23 + $0xc0] sm:$0xf] %vm590_vm1, %v574_v42 }
  0x9c   : > { %592 = vst.msk [vmem:[%s923_s23 + $0x4] sm:$0xf] %vm590_vm1, %v527_v43 }
  0x9d   : > { %608 = vst.msk [vmem:[%s923_s23 + $0x44] sm:$0xf] %vm590_vm1, %v543_v45 }
  0x9f   : > { %v448_v46 = vpop.f32.mrf.mxu2  ;;  %v488_v48 = vpop.f32.mrf.mxu3 }
  0xa0   : > { %v559_v47 = vpack.c.bf16 %v448_v46, %v448_v46  ;;  %v371_v49 = vpop.f32.mrf.mxu0  ;;  %v575_v50 = vpack.c.bf16 %v488_v48, %v488_v48  ;;  %v411_v52 = vpop.f32.mrf.mxu1 }
  0xa1   : > { %v528_v51 = vpack.c.bf16 %v371_v49, %v371_v49  ;;  %v544_v53 = vpack.c.bf16 %v411_v52, %v411_v52 }
  0xa2   : > { %624 = vst.msk [vmem:[%s923_s23 + $0x84] sm:$0xf] %vm590_vm1, %v559_v47 }
  0xa3   : > { %640 = vst.msk [vmem:[%s923_s23 + $0xc4] sm:$0xf] %vm590_vm1, %v575_v50 }
  0xa4   : > { %593 = vst.msk [vmem:[%s923_s23 + $0x8] sm:$0xf] %vm590_vm1, %v528_v51 }
  0xa5   : > { %609 = vst.msk [vmem:[%s923_s23 + $0x48] sm:$0xf] %vm590_vm1, %v544_v53 }
  0xa7   : > { %v451_v54 = vpop.f32.mrf.mxu2  ;;  %v491_v56 = vpop.f32.mrf.mxu3 }
  0xa8   : > { %v560_v55 = vpack.c.bf16 %v451_v54, %v451_v54  ;;  %v373_v57 = vpop.f32.mrf.mxu0  ;;  %v576_v58 = vpack.c.bf16 %v491_v56, %v491_v56  ;;  %v413_v60 = vpop.f32.mrf.mxu1 }
  0xa9   : > { %v529_v59 = vpack.c.bf16 %v373_v57, %v373_v57  ;;  %v545_v61 = vpack.c.bf16 %v413_v60, %v413_v60 }
  0xaa   : > { %625 = vst.msk [vmem:[%s923_s23 + $0x88] sm:$0xf] %vm590_vm1, %v560_v55 }
  0xab   : > { %641 = vst.msk [vmem:[%s923_s23 + $0xc8] sm:$0xf] %vm590_vm1, %v576_v58 }
  0xac   : > { %594 = vst.msk [vmem:[%s923_s23 + $0xc] sm:$0xf] %vm590_vm1, %v529_v59 }
  0xad   : > { %610 = vst.msk [vmem:[%s923_s23 + $0x4c] sm:$0xf] %vm590_vm1, %v545_v61 }
  0xaf   : > { %v453_v62 = vpop.f32.mrf.mxu2  ;;  %v493_v0 = vpop.f32.mrf.mxu3 }
  0xb0   : > { %v561_v63 = vpack.c.bf16 %v453_v62, %v453_v62  ;;  %v376_v1 = vpop.f32.mrf.mxu0  ;;  %v577_v2 = vpack.c.bf16 %v493_v0, %v493_v0  ;;  %v416_v4 = vpop.f32.mrf.mxu1 }
  0xb1   : > { %v530_v3 = vpack.c.bf16 %v376_v1, %v376_v1  ;;  %v546_v5 = vpack.c.bf16 %v416_v4, %v416_v4 }
  0xb2   : > { %626 = vst.msk [vmem:[%s923_s23 + $0x8c] sm:$0xf] %vm590_vm1, %v561_v63 }
  0xb3   : > { %642 = vst.msk [vmem:[%s923_s23 + $0xcc] sm:$0xf] %vm590_vm1, %v577_v2 }
  0xb4   : > { %595 = vst.msk [vmem:[%s923_s23 + $0x10] sm:$0xf] %vm590_vm1, %v530_v3 }
  0xb5   : > { %611 = vst.msk [vmem:[%s923_s23 + $0x50] sm:$0xf] %vm590_vm1, %v546_v5 }
  0xb7   : > { %v456_v6 = vpop.f32.mrf.mxu2  ;;  %v496_v8 = vpop.f32.mrf.mxu3 }
  0xb8   : > { %v562_v7 = vpack.c.bf16 %v456_v6, %v456_v6  ;;  %v378_v9 = vpop.f32.mrf.mxu0  ;;  %v578_v10 = vpack.c.bf16 %v496_v8, %v496_v8  ;;  %v418_v12 = vpop.f32.mrf.mxu1 }
  0xb9   : > { %v531_v11 = vpack.c.bf16 %v378_v9, %v378_v9  ;;  %v547_v13 = vpack.c.bf16 %v418_v12, %v418_v12 }
  0xba   : > { %627 = vst.msk [vmem:[%s923_s23 + $0x90] sm:$0xf] %vm590_vm1, %v562_v7 }
  0xbb   : > { %643 = vst.msk [vmem:[%s923_s23 + $0xd0] sm:$0xf] %vm590_vm1, %v578_v10 }
  0xbc   : > { %596 = vst.msk [vmem:[%s923_s23 + $0x14] sm:$0xf] %vm590_vm1, %v531_v11 }
  0xbd   : > { %612 = vst.msk [vmem:[%s923_s23 + $0x54] sm:$0xf] %vm590_vm1, %v547_v13 }
  0xbf   : > { %v458_v14 = vpop.f32.mrf.mxu2  ;;  %v498_v16 = vpop.f32.mrf.mxu3 }
  0xc0   : > { %v563_v15 = vpack.c.bf16 %v458_v14, %v458_v14  ;;  %v381_v17 = vpop.f32.mrf.mxu0  ;;  %v579_v18 = vpack.c.bf16 %v498_v16, %v498_v16  ;;  %v421_v20 = vpop.f32.mrf.mxu1 }
  0xc1   : > { %v532_v19 = vpack.c.bf16 %v381_v17, %v381_v17  ;;  %v548_v21 = vpack.c.bf16 %v421_v20, %v421_v20 }
  0xc2   : > { %628 = vst.msk [vmem:[%s923_s23 + $0x94] sm:$0xf] %vm590_vm1, %v563_v15 }
  0xc3   : > { %644 = vst.msk [vmem:[%s923_s23 + $0xd4] sm:$0xf] %vm590_vm1, %v579_v18 }
  0xc4   : > { %597 = vst.msk [vmem:[%s923_s23 + $0x18] sm:$0xf] %vm590_vm1, %v532_v19 }
  0xc5   : > { %613 = vst.msk [vmem:[%s923_s23 + $0x58] sm:$0xf] %vm590_vm1, %v548_v21 }
  0xc7   : > { %v461_v22 = vpop.f32.mrf.mxu2  ;;  %v501_v24 = vpop.f32.mrf.mxu3 }
  0xc8   : > { %v564_v23 = vpack.c.bf16 %v461_v22, %v461_v22  ;;  %v383_v25 = vpop.f32.mrf.mxu0  ;;  %v580_v26 = vpack.c.bf16 %v501_v24, %v501_v24  ;;  %v423_v28 = vpop.f32.mrf.mxu1 }
  0xc9   : > { %v533_v27 = vpack.c.bf16 %v383_v25, %v383_v25  ;;  %v549_v29 = vpack.c.bf16 %v423_v28, %v423_v28 }
  0xca   : > { %629 = vst.msk [vmem:[%s923_s23 + $0x98] sm:$0xf] %vm590_vm1, %v564_v23 }
  0xcb   : > { %645 = vst.msk [vmem:[%s923_s23 + $0xd8] sm:$0xf] %vm590_vm1, %v580_v26 }
  0xcc   : > { %598 = vst.msk [vmem:[%s923_s23 + $0x1c] sm:$0xf] %vm590_vm1, %v533_v27 }
  0xcd   : > { %614 = vst.msk [vmem:[%s923_s23 + $0x5c] sm:$0xf] %vm590_vm1, %v549_v29 }
  0xcf   : > { %v463_v30 = vpop.f32.mrf.mxu2  ;;  %v503_v32 = vpop.f32.mrf.mxu3 }
  0xd0   : > { %v565_v31 = vpack.c.bf16 %v463_v30, %v463_v30  ;;  %v386_v33 = vpop.f32.mrf.mxu0  ;;  %v581_v34 = vpack.c.bf16 %v503_v32, %v503_v32  ;;  %v426_v36 = vpop.f32.mrf.mxu1 }
  0xd1   : > { %v534_v35 = vpack.c.bf16 %v386_v33, %v386_v33  ;;  %v550_v37 = vpack.c.bf16 %v426_v36, %v426_v36 }
  0xd2   : > { %630 = vst.msk [vmem:[%s923_s23 + $0x9c] sm:$0xf] %vm590_vm1, %v565_v31 }
  0xd3   : > { %646 = vst.msk [vmem:[%s923_s23 + $0xdc] sm:$0xf] %vm590_vm1, %v581_v34 }
  0xd4   : > { %599 = vst.msk [vmem:[%s923_s23 + $0x20] sm:$0xf] %vm590_vm1, %v534_v35 }
  0xd5   : > { %615 = vst.msk [vmem:[%s923_s23 + $0x60] sm:$0xf] %vm590_vm1, %v550_v37 }
  0xd7   : > { %v466_v38 = vpop.f32.mrf.mxu2  ;;  %v506_v40 = vpop.f32.mrf.mxu3 }
  0xd8   : > { %v566_v39 = vpack.c.bf16 %v466_v38, %v466_v38  ;;  %v388_v41 = vpop.f32.mrf.mxu0  ;;  %v582_v42 = vpack.c.bf16 %v506_v40, %v506_v40  ;;  %v428_v44 = vpop.f32.mrf.mxu1 }
  0xd9   : > { %v535_v43 = vpack.c.bf16 %v388_v41, %v388_v41  ;;  %v551_v45 = vpack.c.bf16 %v428_v44, %v428_v44 }
  0xda   : > { %631 = vst.msk [vmem:[%s923_s23 + $0xa0] sm:$0xf] %vm590_vm1, %v566_v39 }
  0xdb   : > { %647 = vst.msk [vmem:[%s923_s23 + $0xe0] sm:$0xf] %vm590_vm1, %v582_v42 }
  0xdc   : > { %600 = vst.msk [vmem:[%s923_s23 + $0x24] sm:$0xf] %vm590_vm1, %v535_v43 }
  0xdd   : > { %616 = vst.msk [vmem:[%s923_s23 + $0x64] sm:$0xf] %vm590_vm1, %v551_v45 }
  0xdf   : > { %v468_v46 = vpop.f32.mrf.mxu2  ;;  %v508_v48 = vpop.f32.mrf.mxu3 }
  0xe0   : > { %v567_v47 = vpack.c.bf16 %v468_v46, %v468_v46  ;;  %v391_v49 = vpop.f32.mrf.mxu0  ;;  %v583_v50 = vpack.c.bf16 %v508_v48, %v508_v48  ;;  %v431_v52 = vpop.f32.mrf.mxu1 }
  0xe1   : > { %v536_v51 = vpack.c.bf16 %v391_v49, %v391_v49  ;;  %v552_v53 = vpack.c.bf16 %v431_v52, %v431_v52 }
  0xe2   : > { %632 = vst.msk [vmem:[%s923_s23 + $0xa4] sm:$0xf] %vm590_vm1, %v567_v47 }
  0xe3   : > { %648 = vst.msk [vmem:[%s923_s23 + $0xe4] sm:$0xf] %vm590_vm1, %v583_v50 }
  0xe4   : > { %601 = vst.msk [vmem:[%s923_s23 + $0x28] sm:$0xf] %vm590_vm1, %v536_v51 }
  0xe5   : > { %617 = vst.msk [vmem:[%s923_s23 + $0x68] sm:$0xf] %vm590_vm1, %v552_v53 }
  0xe7   : > { %v471_v54 = vpop.f32.mrf.mxu2  ;;  %v511_v56 = vpop.f32.mrf.mxu3 }
  0xe8   : > { %v568_v55 = vpack.c.bf16 %v471_v54, %v471_v54  ;;  %v393_v57 = vpop.f32.mrf.mxu0  ;;  %v584_v58 = vpack.c.bf16 %v511_v56, %v511_v56  ;;  %v433_v60 = vpop.f32.mrf.mxu1 }
  0xe9   : > { %v537_v59 = vpack.c.bf16 %v393_v57, %v393_v57  ;;  %v553_v61 = vpack.c.bf16 %v433_v60, %v433_v60 }
  0xea   : > { %633 = vst.msk [vmem:[%s923_s23 + $0xa8] sm:$0xf] %vm590_vm1, %v568_v55 }
  0xeb   : > { %649 = vst.msk [vmem:[%s923_s23 + $0xe8] sm:$0xf] %vm590_vm1, %v584_v58 }
  0xec   : > { %602 = vst.msk [vmem:[%s923_s23 + $0x2c] sm:$0xf] %vm590_vm1, %v537_v59 }
  0xed   : > { %618 = vst.msk [vmem:[%s923_s23 + $0x6c] sm:$0xf] %vm590_vm1, %v553_v61 }
  0xef   : > { %v473_v62 = vpop.f32.mrf.mxu2  ;;  %v513_v0 = vpop.f32.mrf.mxu3 }
  0xf0   : > { %v569_v63 = vpack.c.bf16 %v473_v62, %v473_v62  ;;  %v396_v1 = vpop.f32.mrf.mxu0  ;;  %v585_v2 = vpack.c.bf16 %v513_v0, %v513_v0  ;;  %v436_v4 = vpop.f32.mrf.mxu1 }
  0xf1   : > { %v538_v3 = vpack.c.bf16 %v396_v1, %v396_v1  ;;  %v554_v5 = vpack.c.bf16 %v436_v4, %v436_v4 }
  0xf2   : > { %634 = vst.msk [vmem:[%s923_s23 + $0xac] sm:$0xf] %vm590_vm1, %v569_v63 }
  0xf3   : > { %650 = vst.msk [vmem:[%s923_s23 + $0xec] sm:$0xf] %vm590_vm1, %v585_v2 }
  0xf4   : > { %603 = vst.msk [vmem:[%s923_s23 + $0x30] sm:$0xf] %vm590_vm1, %v538_v3 }
  0xf5   : > { %619 = vst.msk [vmem:[%s923_s23 + $0x70] sm:$0xf] %vm590_vm1, %v554_v5 }
  0xf7   : > { %v476_v6 = vpop.f32.mrf.mxu2  ;;  %v516_v8 = vpop.f32.mrf.mxu3 }
  0xf8   : > { %v570_v7 = vpack.c.bf16 %v476_v6, %v476_v6  ;;  %v398_v9 = vpop.f32.mrf.mxu0  ;;  %v586_v10 = vpack.c.bf16 %v516_v8, %v516_v8  ;;  %v438_v12 = vpop.f32.mrf.mxu1 }
  0xf9   : > { %v539_v11 = vpack.c.bf16 %v398_v9, %v398_v9  ;;  %v555_v13 = vpack.c.bf16 %v438_v12, %v438_v12 }
  0xfa   : > { %635 = vst.msk [vmem:[%s923_s23 + $0xb0] sm:$0xf] %vm590_vm1, %v570_v7 }
  0xfb   : > { %651 = vst.msk [vmem:[%s923_s23 + $0xf0] sm:$0xf] %vm590_vm1, %v586_v10 }
  0xfc   : > { %604 = vst.msk [vmem:[%s923_s23 + $0x34] sm:$0xf] %vm590_vm1, %v539_v11 }
  0xfd   : > { %620 = vst.msk [vmem:[%s923_s23 + $0x74] sm:$0xf] %vm590_vm1, %v555_v13 }
  0xff   : > { %v478_v14 = vpop.f32.mrf.mxu2  ;;  %v518_v16 = vpop.f32.mrf.mxu3 }
 0x100   : > { %v571_v15 = vpack.c.bf16 %v478_v14, %v478_v14  ;;  %v401_v17 = vpop.f32.mrf.mxu0  ;;  %v587_v18 = vpack.c.bf16 %v518_v16, %v518_v16  ;;  %v441_v20 = vpop.f32.mrf.mxu1 }
 0x101   : > { %v540_v19 = vpack.c.bf16 %v401_v17, %v401_v17  ;;  %v556_v21 = vpack.c.bf16 %v441_v20, %v441_v20 }
 0x102   : > { %636 = vst.msk [vmem:[%s923_s23 + $0xb4] sm:$0xf] %vm590_vm1, %v571_v15 }
 0x103   : > { %652 = vst.msk [vmem:[%s923_s23 + $0xf4] sm:$0xf] %vm590_vm1, %v587_v18 }
 0x104   : > { %605 = vst.msk [vmem:[%s923_s23 + $0x38] sm:$0xf] %vm590_vm1, %v540_v19 }
 0x105   : > { %621 = vst.msk [vmem:[%s923_s23 + $0x78] sm:$0xf] %vm590_vm1, %v556_v21 }
 0x107   : > { %v481_v22 = vpop.f32.mrf.mxu2  ;;  %v521_v24 = vpop.f32.mrf.mxu3 }
 0x108   : > { %v572_v23 = vpack.c.bf16 %v481_v22, %v481_v22  ;;  %v403_v25 = vpop.f32.mrf.mxu0  ;;  %v588_v26 = vpack.c.bf16 %v521_v24, %v521_v24  ;;  %v443_v28 = vpop.f32.mrf.mxu1 }
 0x109   : > { %v541_v27 = vpack.c.bf16 %v403_v25, %v403_v25  ;;  %v557_v29 = vpack.c.bf16 %v443_v28, %v443_v28 }
 0x10a   : > { %637 = vst.msk [vmem:[%s923_s23 + $0xb8] sm:$0xf] %vm590_vm1, %v572_v23 }
 0x10b   : > { %653 = vst.msk [vmem:[%s923_s23 + $0xf8] sm:$0xf] %vm590_vm1, %v588_v26 }
 0x10c   : > { %606 = vst.msk [vmem:[%s923_s23 + $0x3c] sm:$0xf] %vm590_vm1, %v541_v27 }
 0x10d   : > { %622 = vst.msk [vmem:[%s923_s23 + $0x7c] sm:$0xf] %vm590_vm1, %v557_v29 }
 0x10f   : > { %v483_v30 = vpop.f32.mrf.mxu2  ;;  %v523_v32 = vpop.f32.mrf.mxu3 }
 0x110   : > { %v573_v31 = vpack.c.bf16 %v483_v30, %v483_v30  ;;  %v589_v33 = vpack.c.bf16 %v523_v32, %v523_v32 }
 0x112   : > { %638 = vst.msk [vmem:[%s923_s23 + $0xbc] sm:$0xf] %vm590_vm1, %v573_v31 }
 0x113   : > { %654 = vst.msk [vmem:[%s923_s23 + $0xfc] sm:$0xf] %vm590_vm1, %v589_v33 }
 0x114 PF: > { %s12_s9 = sadd.s32 1, %s784_s9  }
 0x115   : > { %p9_p4 = scmp.ge.s32.totalorder %s12_s9, 4  }
 0x117   :  { %11 = sbr.rel (!%p9_p4) target bundleno = 1 (0x1), region = 58 }

</bundles_post_ra>
